<compile_context>
chip_gen: v5e
topology: v5e:2x2
jax: 0.10.0
libtpu: 0.0.40
codegen_flags: <defaults>
</compile_context>

<pallas_src>
import jax
import jax.numpy as jnp
from jax.experimental import pallas as pl
from jax.experimental.pallas import tpu as pltpu

NUM_CLASSES = 10   # stand-in for args.num_classes (undefined in the PyTorch source)
C_H = 64           # channels of h  (h and l concat to 128 = conv1 in_channels)
C_L = 64           # channels of l
SPATIAL = 5        # avg_pool2d(kernel_size=5) over a 5x5 map -> 1x1
LANES = 128


def _round_up(x, m):
    return ((x + m - 1) // m) * m


def _classify_kernel(a_ref, w_ref, b_ref, o_ref):
    # One fused GEMM per batch tile:
    #   out = pooled_act @ Wf + bf
    # Wf already folds conv1 (1x1) and linear1 (W1 @ W2); N is padded to a
    # lane-dense 128 so the store is an unmasked vst.
    acc = jnp.dot(a_ref[...], w_ref[...], preferred_element_type=jnp.float32)
    o_ref[...] = (acc + b_ref[...]).astype(o_ref.dtype)


def fuse_params(params):
    """Precompute the fused weight/bias once (init / param-load time)."""
    w1, b1, w2, b2 = params["w1"], params["b1"], params["w2"], params["b2"]
    nc = w2.shape[1]
    NP = _round_up(max(nc, LANES), LANES)              # lane-dense output width
    hp = jax.lax.Precision.HIGHEST                     # tiny GEMM; exact fold
    wf = jnp.dot(w1, w2, precision=hp)                 # (128, nc)
    bf = jnp.dot(b1, w2, precision=hp) + b2            # (1, nc)
    wf = jnp.pad(wf, ((0, 0), (0, NP - nc)))           # (128, NP)
    bf = jnp.pad(bf, ((0, 0), (0, NP - nc)))           # (1, NP)
    return {"wf": wf, "bf": bf, "nc": nc}


def classify_forward(h, l, h_p, l_p, fused):
    # h_p, l_p are unused by the PyTorch forward(); accepted for signature parity.
    del h_p, l_p
    wf, bf, nc = fused["wf"], fused["bf"], fused["nc"]

    B = h.shape[0]
    Cin, NP = wf.shape

    # Spatial average pool in the wrapper (commutes with the 1x1 conv), then
    # concat the two halves so the kernel does a single (TB,128)x(128,NP) dot.
    act = jnp.concatenate(
        [h.mean(axis=(2, 3)), l.mean(axis=(2, 3))], axis=1)   # (B, 128)
    act = act.astype(jnp.float32)

    # Batch tile: activations are only 512 B/row, so go big (cap 1024) to
    # amortize the ~0.35 us per-grid-step overhead, but keep >= 2 grid steps
    # when B allows so the "parallel" axis can use both v7x TensorCores.
    TB = min(1024, max(8, _round_up(pl.cdiv(B, 2), 8)))
    Bp = _round_up(B, TB)
    if Bp != B:
        act = jnp.pad(act, ((0, Bp - B), (0, 0)))

    out = pl.pallas_call(
        _classify_kernel,
        out_shape=jax.ShapeDtypeStruct((Bp, NP), jnp.float32),
        grid_spec=pltpu.PrefetchScalarGridSpec(
            num_scalar_prefetch=0,
            grid=(Bp // TB,),
            in_specs=[
                pl.BlockSpec((TB, Cin), lambda i: (i, 0)),     # pooled activations
                pl.BlockSpec((Cin, NP), lambda i: (0, 0)),     # fused weight (64 KiB)
                pl.BlockSpec((1, NP), lambda i: (0, 0)),       # fused bias
            ],
            out_specs=pl.BlockSpec((TB, NP), lambda i: (i, 0)),
        ),
        compiler_params=pltpu.CompilerParams(
            dimension_semantics=("parallel",)),
    )(act, wf, bf)

    out = out[:B, :nc]
    # x.squeeze(-1).squeeze(-1): only does something when num_classes == 1
    if nc == 1:
        out = out[:, 0]
    return out


def init_params(key):
    # Shapes match the PyTorch module:
    #   conv1.weight: (512, 128, 1, 1) -> stored as (128, 512) matmul weight
    #   conv1.bias:   (512,)           -> stored as (1, 512)
    #   linear1.weight: (NC, 512)      -> stored as (512, NC)
    #   linear1.bias:   (NC,)          -> stored as (1, NC)
    k1, k2, k3, k4 = jax.random.split(key, 4)
    w1 = jax.random.normal(k1, (128, 512), jnp.float32) * (1.0 / 128.0) ** 0.5
    b1 = jax.random.normal(k2, (1, 512), jnp.float32) * 0.01
    w2 = jax.random.normal(k3, (512, NUM_CLASSES), jnp.float32) * (1.0 / 512.0) ** 0.5
    b2 = jax.random.normal(k4, (1, NUM_CLASSES), jnp.float32) * 0.01
    return {"w1": w1, "b1": b1, "w2": w2, "b2": b2}


def _reference(h, l, params):
    # Pure-JAX reference of the original (unfused) forward for sanity checking.
    x = jnp.concatenate([h, l], axis=1)                        # (B,128,5,5)
    B = x.shape[0]
    xp = jnp.transpose(x, (0, 2, 3, 1)).reshape(B, -1, 128)    # (B,25,128)
    y = jnp.einsum("bsc,co->bso", xp, params["w1"]) + params["b1"][None]
    p = jnp.mean(y, axis=1)                                    # (B,512)
    return p @ params["w2"] + params["b2"]                     # (B,NC)


if __name__ == "__main__":
    key = jax.random.PRNGKey(0)
    kp, kh, kl, khp, klp = jax.random.split(key, 5)

    B = 2
    h = jax.random.normal(kh, (B, C_H, SPATIAL, SPATIAL), jnp.float32)
    l = jax.random.normal(kl, (B, C_L, SPATIAL, SPATIAL), jnp.float32)
    # h_p / l_p are unused in forward(); placeholder shapes for signature parity.
    h_p = jax.random.normal(khp, (B, 60, SPATIAL, SPATIAL), jnp.float32)
    l_p = jax.random.normal(klp, (B, 60, SPATIAL, SPATIAL), jnp.float32)

    params = init_params(kp)
    fused = fuse_params(params)          # precomputed once, reused every forward

    out = classify_forward(h, l, h_p, l_p, fused)
    out = jax.block_until_ready(out)

    ref = _reference(h, l, params)
    assert out.shape == (B, NUM_CLASSES), out.shape
    assert jnp.allclose(out, ref, atol=2e-4, rtol=1e-4), (
        float(jnp.max(jnp.abs(out - ref))))
    print("KERNEL_OK")
</pallas_src>

<mosaic_0001>
module attributes {stable_mosaic.version = 11 : i64} {
  func.func @_classify_kernel(%arg0: i32, %arg1: memref<8x128xf32, #tpu.memory_space<vmem>>, %arg2: memref<128x128xf32, #tpu.memory_space<vmem>>, %arg3: memref<1x128xf32, #tpu.memory_space<vmem>>, %arg4: memref<8x128xf32, #tpu.memory_space<vmem>>) attributes {dimension_semantics = [#tpu.dimension_semantics<parallel>], iteration_bounds = array<i64: 1>, scalar_prefetch = 0 : i64, scratch_operands = 0 : i64, tpu.core_type = #tpu.core_type<tc>, window_params = [{transform_indices = @transform_0, window_bounds = array<i64: 8, 128>}, {pipeline_mode = #tpu.pipeline_mode<synchronous>, transform_indices = @transform_1, window_bounds = array<i64: 128, 128>}, {pipeline_mode = #tpu.pipeline_mode<synchronous>, transform_indices = @transform_2, window_bounds = array<i64: 1, 128>}, {transform_indices = @transform_3, window_bounds = array<i64: 8, 128>}]} {
    %c0 = arith.constant 0 : index
    %c0_0 = arith.constant 0 : index
    %0 = vector.load %arg1[%c0, %c0_0] : memref<8x128xf32, #tpu.memory_space<vmem>>, vector<8x128xf32>
    %c0_1 = arith.constant 0 : index
    %c0_2 = arith.constant 0 : index
    %1 = vector.load %arg2[%c0_1, %c0_2] : memref<128x128xf32, #tpu.memory_space<vmem>>, vector<128x128xf32>
    %cst = arith.constant dense<0.000000e+00> : vector<8x128xf32>
    %2 = tpu.matmul %0, %1, %cst {dimension_numbers = #tpu.dot_dimension_numbers<[1], [0], [0], [1], [0, 0, 1, 1], [], []>} : vector<8x128xf32>, vector<128x128xf32>, vector<8x128xf32> -> vector<8x128xf32>
    %c0_3 = arith.constant 0 : index
    %c0_4 = arith.constant 0 : index
    %3 = vector.load %arg3[%c0_3, %c0_4] : memref<1x128xf32, #tpu.memory_space<vmem>>, vector<1x128xf32>
    %4 = vector.broadcast %3 : vector<1x128xf32> to vector<8x128xf32>
    %5 = arith.addf %2, %4 : vector<8x128xf32>
    %c0_5 = arith.constant 0 : index
    %c0_6 = arith.constant 0 : index
    %6 = vector.load %arg4[%c0_5, %c0_6] : memref<8x128xf32, #tpu.memory_space<vmem>>, vector<8x128xf32>
    tpu.vector_store %arg4[%c0_5, %c0_6], %5 {strides = array<i32>} : memref<8x128xf32, #tpu.memory_space<vmem>>, vector<8x128xf32>,
    return
  }
  func.func @transform_0(%arg0: i32) -> (i32, i32) {
    %c0_i32 = arith.constant 0 : i32
    %c0_i32_0 = arith.constant 0 : i32
    return %arg0, %c0_i32 : i32, i32
  }
  func.func @transform_1(%arg0: i32) -> (i32, i32) {
    %c0_i32 = arith.constant 0 : i32
    %c0_i32_0 = arith.constant 0 : i32
    %c0_i32_1 = arith.constant 0 : i32
    return %c0_i32, %c0_i32_0 : i32, i32
  }
  func.func @transform_2(%arg0: i32) -> (i32, i32) {
    %c0_i32 = arith.constant 0 : i32
    %c0_i32_0 = arith.constant 0 : i32
    %c0_i32_1 = arith.constant 0 : i32
    return %c0_i32, %c0_i32_0 : i32, i32
  }
  func.func @transform_3(%arg0: i32) -> (i32, i32) {
    %c0_i32 = arith.constant 0 : i32
    %c0_i32_0 = arith.constant 0 : i32
    return %arg0, %c0_i32 : i32, i32
  }
}

</mosaic_0001>

<bundles_post_ra>
// kernel: tpu_custom_call.1
= control target key start
LH: loop header
LB: loop body
LE: loop exit
PB: predicated region body
PF: predicated region fallthrough
CT: control target
= control target key end

     0   :  { %8 = vsyncpa [#allocation3], 0  ;;  %s226_s0 = inlined_call_operand.hbm [shape: f32[8,128], index: 0, kind: input, shape index: {}]   ;;  %s227_s1 = inlined_call_operand.hbm [shape: f32[128,128], index: 1, kind: input, shape index: {}]   ;;  %s228_s2 = inlined_call_operand.vmem [shape: f32[1,128], index: 2, kind: input, shape index: {}]   ;;  %s229_s3 = inlined_call_operand.hbm [shape: f32[8,128], index: 3, kind: output, shape index: {}]  }
   0x1   :  { %9 = vsyncpa [#allocation6], 0 }
   0x2   :  { %10 = vsyncpa [#allocation4], 0  ;;  %s16_s14 = sshll.u32 %s226_s0, 4  ;;  %s189_s15 = smov [#allocation2]   ;;  %s17_s14 = int_to_ptr.hbm [resolvable:$true] %s16_s14 }
   0x3   :  { %s18_s16 = sshll.u32 %s189_s15, 4  ;;  %s26_s19 = sshll.u32 %s227_s1, 4  ;;  %s19_s16 = int_to_ptr.vmem [resolvable:$true] %s18_s16  ;;  %s27_s19 = int_to_ptr.hbm [resolvable:$true] %s26_s19 }
   0x4   :  { %21 = dma.hbm_to_vmem [thread:$0]  %s17_s14, 128, %s19_s16, [#allocation3]  }
   0x5   :  { %s190_s20 = smov [#allocation5]   ;;  %s191_s22 = smov 128  }
   0x6   :  { %s28_s21 = sshll.u32 %s190_s20, 4  ;;  %s192_s23 = smov 8   ;;  %s29_s21 = int_to_ptr.vmem [resolvable:$true] %s28_s21 }
   0x7   :  { %34 = dma.hbm_to_vmem [thread:$0]  %s27_s19, 2048, %s29_s21, [#allocation6], %s191_s22, %s191_s22, %s192_s23  }
   0x8   :  { %183 = dma.done.wait [#allocation3], 128  }
   0x9   :  { %184 = vsyncadd [#allocation3], 4294967168 }
   0xa   :  { %185 = dma.done.wait [#allocation6], 2048  }
   0xb   :  { %186 = vsyncadd [#allocation6], 4294965248  ;;  %v61_v0 = vld [vmem:[#allocation5 + $0x78] sm:$0xff]  ;;  %v60_v1 = vld [vmem:[#allocation5 + $0x70] sm:$0xff]  ;;  %s193_s24 = smov [#allocation7]   ;;  %s94_s28 = sshll.u32 %s229_s3, 4  ;;  %s95_s28 = int_to_ptr.hbm [resolvable:$true] %s94_s28 }
   0xc   :  { %66 = vmatpush.msra.mxu0 %v61_v0  ;;  %v59_v2 = vld [vmem:[#allocation5 + $0x68] sm:$0xff]  ;;  %v58_v3 = vld [vmem:[#allocation5 + $0x60] sm:$0xff]  ;;  %v57_v4 = vld [vmem:[#allocation5 + $0x58] sm:$0xff]  ;;  %s92_s25 = sshll.u32 %s193_s24, 4  ;;  %s93_s25 = int_to_ptr.vmem [resolvable:$true] %s92_s25 }
   0xd   :  { %v56_v5 = vld [vmem:[#allocation5 + $0x50] sm:$0xff]  ;;  %v55_v6 = vld [vmem:[#allocation5 + $0x48] sm:$0xff]  ;;  %v54_v7 = vld [vmem:[#allocation5 + $0x40] sm:$0xff] }
   0xe   :  { %67 = vmatpush.msra.mxu0 %v60_v1  ;;  %v53_v8 = vld [vmem:[#allocation5 + $0x38] sm:$0xff]  ;;  %v52_v9 = vld [vmem:[#allocation5 + $0x30] sm:$0xff]  ;;  %v51_v10 = vld [vmem:[#allocation5 + $0x28] sm:$0xff] }
   0xf   :  { %v50_v11 = vld [vmem:[#allocation5 + $0x20] sm:$0xff]  ;;  %v49_v12 = vld [vmem:[#allocation5 + $0x18] sm:$0xff]  ;;  %v48_v13 = vld [vmem:[#allocation5 + $0x10] sm:$0xff] }
  0x10   :  { %68 = vmatpush.msra.mxu0 %v59_v2  ;;  %v47_v14 = vld [vmem:[#allocation5 + $0x8] sm:$0xff]  ;;  %v46_v15 = vld [vmem:[#allocation5] sm:$0xff]  ;;  %v45_v16 = vld [vmem:[#allocation2] sm:$0xff] }
  0x11   :  { %v110_v17 = vld [vmem:[%s228_s2] ss:$0 sm:$0xff] }
  0x12   :  { %69 = vmatpush.msra.mxu0 %v58_v3 }
  0x14   :  { %70 = vmatpush.msra.mxu0 %v57_v4 }
  0x16   :  { %71 = vmatpush.msra.mxu0 %v56_v5 }
  0x18   :  { %72 = vmatpush.msra.mxu0 %v55_v6 }
  0x1a   :  { %73 = vmatpush.msra.mxu0 %v54_v7 }
  0x1c   :  { %74 = vmatpush.msra.mxu0 %v53_v8 }
  0x1e   :  { %75 = vmatpush.msra.mxu0 %v52_v9 }
  0x20   :  { %76 = vmatpush.msra.mxu0 %v51_v10 }
  0x22   :  { %77 = vmatpush.msra.mxu0 %v50_v11 }
  0x24   :  { %78 = vmatpush.msra.mxu0 %v49_v12 }
  0x26   :  { %79 = vmatpush.msra.mxu0 %v48_v13 }
  0x28   :  { %80 = vmatpush.msra.mxu0 %v47_v14 }
  0x2a   :  { %81 = vmatpush.msra.mxu0 %v46_v15 }
  0x2b   :  { %82 = vmatmul.f32.vlgmr.msra.gmra.mxu0 %v45_v16 }
  0xa8   :  { %v83_v18 = vpop.f32.mrf.mxu0 }
  0xa9   :  { %v84_v19 = vadd.f32 %v110_v17, %v83_v18 }
  0xab   :  { %86 = vst [vmem:[#allocation7] sm:$0xff] %v84_v19 }
  0xac   :  { %97 = dma.vmem_to_hbm [thread:$0]  %s93_s25, 128, %s95_s28, [#allocation4]  }
  0xad   :  { %187 = dma.done.wait [#allocation4], 128  }
  0xae   :  { %188 = vsyncadd [#allocation4], 4294967168 }
  0xaf   :  { %102 = vsyncpa [#allocation3], 1 }
  0xb0   :  { %103 = vsyncpa [#allocation6], 1 }
  0xb1   :  { %104 = vsyncpa [#allocation4], 1 }

</bundles_post_ra>
